<compile_context>
chip_gen: v5e
topology: v5e:2x2
jax: 0.10.0
libtpu: 0.0.40
codegen_flags: <defaults>
</compile_context>

<pallas_src>
import jax
import jax.numpy as jnp
from jax.experimental import pallas as pl
from jax.experimental.pallas import tpu as pltpu


def _choose_row_tile(n_rows, c, itemsize, sub, target_block_bytes):
    """Largest row tile TR such that TR divides n_rows, TR % sub == 0 (or
    TR == n_rows), and a (c, TR, 128) block stays under target_block_bytes."""
    def blk(r):
        return c * r * 128 * itemsize

    if blk(n_rows) <= target_block_bytes:
        return n_rows                      # whole per-batch slab in one block
    best = sub                             # caller guarantees n_rows % sub == 0 here
    for r in range(sub, n_rows + 1, sub):
        if n_rows % r == 0 and blk(r) <= target_block_bytes:
            best = r
    return best


def _triangle_partials_kernel(x_ref, t_ref, out_ref,
                              inter_acc, union_acc, bce_acc, mse_acc):
    r = pl.program_id(2)
    nr = pl.num_programs(2)

    x = x_ref[...].astype(jnp.float32)     # (C, TR, 128) logits
    t = t_ref[...].astype(jnp.float32)     # (C, TR, 128) targets

    # One exp(-|x|) feeds both the stable sigmoid and the stable BCE form.
    e = jnp.exp(-jnp.abs(x))
    inv_1pe = 1.0 / (1.0 + e)              # exact divide: preserves 1e-5 parity
    pred = jnp.where(x >= 0.0, inv_1pe, e * inv_1pe)       # sigmoid(x)

    bce_elem = jnp.maximum(x, 0.0) - x * t + jnp.log1p(e)
    diff = pred - t

    # Partial sums over the sublane (row-tile) axis only; the lane reduction is
    # deferred to the per-(batch, split) finalize step.
    inter_p = jnp.sum(pred * t, axis=1)    # (C, 128)
    union_p = jnp.sum(pred + t, axis=1)    # (C, 128)
    bce_p = jnp.sum(bce_elem, axis=1)      # (C, 128)
    mse_p = jnp.sum(diff * diff, axis=1)   # (C, 128)

    @pl.when(r == 0)
    def _init():
        inter_acc[...] = inter_p
        union_acc[...] = union_p
        bce_acc[...] = bce_p
        mse_acc[...] = mse_p

    @pl.when(r > 0)
    def _accumulate():
        inter_acc[...] += inter_p
        union_acc[...] += union_p
        bce_acc[...] += bce_p
        mse_acc[...] += mse_p

    @pl.when(r == nr - 1)
    def _finalize():
        inter = jnp.sum(inter_acc[...], axis=-1)   # (C,)
        union = jnp.sum(union_acc[...], axis=-1)   # (C,)
        bce_s = jnp.sum(bce_acc[...])              # raw sum; mean taken in wrapper
        mse_s = jnp.sum(mse_acc[...])
        fill = jnp.zeros((1, inter.shape[0]), jnp.float32)
        out_ref[0:1, :] = inter[None, :]
        out_ref[1:2, :] = union[None, :]
        out_ref[2:3, :] = fill + bce_s
        out_ref[3:4, :] = fill + mse_s


def triangle_loss(input_scale, target_scale, *, target_block_bytes=4 << 20):
    """input_scale, target_scale: (B, C, H, W) -> (C,) loss vector."""
    B, C, H, W = input_scale.shape
    hw = H * W
    inv_n_elem = 1.0 / float(C * hw)       # true per-batch element count (pad-free)

    def _prep(a):
        if a.dtype in (jnp.float32, jnp.bfloat16):
            pass
        elif a.dtype == jnp.float16:
            a = a.astype(jnp.bfloat16)     # keep the HBM stream at 2 bytes/elem
        else:
            a = a.astype(jnp.float32)
        return a.reshape(B, C, hw)

    x = _prep(input_scale)
    t = _prep(target_scale)

    isz_x, isz_t = x.dtype.itemsize, t.dtype.itemsize
    isz_max = max(isz_x, isz_t)
    sub = 16 if min(isz_x, isz_t) == 2 else 8   # bf16 packs 16 sublanes per vreg

    r128 = -(-hw // 128)
    slab_bytes = C * r128 * 128 * isz_max
    # Pad the flattened spatial axis only as much as needed:
    #   * slab fits one block -> pad to the next multiple of 128 (often zero);
    #   * slab must be tiled  -> pad so R % sub == 0, guaranteeing a legal
    #     (multiple-of-sub, 128) row tile (never a VMEM-busting full-extent block).
    pad_to = 128 if slab_bytes <= target_block_bytes else sub * 128
    hw_pad = -(-hw // pad_to) * pad_to
    pad = hw_pad - hw
    if pad:
        # Inert pad values: sigmoid(-1e30)=0, bce=0, mse=0, and t=0 adds nothing
        # to inter/union. Means below use the true element count.
        # TODO(synk): for ragged hw this jnp.pad is an extra HBM round trip; an
        # in-kernel masked tail (flat layout + iota mask) would remove it at the
        # cost of half-filled vregs when C < 8.
        x = jnp.pad(x, ((0, 0), (0, 0), (0, pad)), constant_values=-1e30)
        t = jnp.pad(t, ((0, 0), (0, 0), (0, pad)), constant_values=0.0)
    R = hw_pad // 128
    x = x.reshape(B, C, R, 128)
    t = t.reshape(B, C, R, 128)

    TR = _choose_row_tile(R, C, isz_max, sub, target_block_bytes)
    NR = R // TR
    # Odd batch sizes (esp. B=1): split the whole-slab case in two so both v7x
    # TensorCores get work (neutral on single-TC v5e/v6e).
    if (B % 2 == 1) and NR == 1 and R % (2 * sub) == 0:
        TR = R // 2
        NR = 2
    NSPLIT = 2 if NR % 2 == 0 else 1
    NR_inner = NR // NSPLIT
    nri = NR_inner   # captured by the index maps

    # Explicit scoped-VMEM limit: 2 inputs x 2 pipeline buffers x block, plus
    # accumulators and slack; >= 32 MiB so v5e's 16 MiB default never bites and
    # the default 4 MiB blocks stay well under v7x's 64 MiB physical VMEM.
    block_bytes = C * TR * 128 * isz_max
    scratch_bytes = 4 * C * 128 * 4
    vmem_limit = int(max(32 << 20, 4 * block_bytes + scratch_bytes + (2 << 20)))

    parts = pl.pallas_call(
        _triangle_partials_kernel,
        out_shape=jax.ShapeDtypeStruct((B, NSPLIT, 4, C), jnp.float32),
        grid_spec=pltpu.PrefetchScalarGridSpec(
            num_scalar_prefetch=0,
            grid=(B, NSPLIT, NR_inner),
            in_specs=[
                pl.BlockSpec((None, C, TR, 128),
                             lambda b, s, r: (b, 0, s * nri + r, 0)),
                pl.BlockSpec((None, C, TR, 128),
                             lambda b, s, r: (b, 0, s * nri + r, 0)),
            ],
            out_specs=pl.BlockSpec((None, None, 4, C),
                                   lambda b, s, r: (b, s, 0, 0)),
            scratch_shapes=[
                pltpu.VMEM((C, 128), jnp.float32),   # inter partials
                pltpu.VMEM((C, 128), jnp.float32),   # union partials
                pltpu.VMEM((C, 128), jnp.float32),   # bce partials
                pltpu.VMEM((C, 128), jnp.float32),   # mse partials
            ],
        ),
        compiler_params=pltpu.CompilerParams(
            dimension_semantics=("parallel", "parallel", "arbitrary"),
            vmem_limit_bytes=vmem_limit,
        ),
    )(x, t)

    # Cheap nonlinear finalize in JAX (keeps both grid parallel axes shardable).
    sums = parts.sum(axis=1)                     # (B, 4, C)
    inter = sums[:, 0, :]                        # (B, C)
    union = sums[:, 1, :]                        # (B, C)
    bce = sums[:, 2, 0] * inv_n_elem             # (B,)
    mse = sums[:, 3, 0] * inv_n_elem             # (B,)
    # (1+MSE)*BCE/(IOU+1) with IOU=(inter+1)/(union-inter+1), folded to one divide.
    losses = (1.0 + mse)[:, None] * bce[:, None] * (union - inter + 1.0) / (union + 2.0)
    return losses.sum(axis=0) / B


def triangle_loss_ref(x, t):
    """Pure-JAX reference matching the PyTorch module exactly."""
    x = x.astype(jnp.float32)
    t = t.astype(jnp.float32)
    B = x.shape[0]
    pred = jax.nn.sigmoid(x)
    inter = (pred * t).sum(axis=(2, 3))                         # (B, C)
    union = (pred + t).sum(axis=(2, 3))                         # (B, C)
    iou = (inter + 1.0) / (union - inter + 1.0)                 # (B, C)
    bce_elem = jnp.maximum(x, 0.0) - x * t + jnp.log1p(jnp.exp(-jnp.abs(x)))
    bce = bce_elem.reshape(B, -1).mean(axis=1)                  # (B,)
    mse = ((pred - t) ** 2).reshape(B, -1).mean(axis=1)         # (B,)
    losses = (1.0 + mse)[:, None] * bce[:, None] / (iou + 1.0)  # (B, C)
    return losses.sum(axis=0) / B                               # (C,)


if __name__ == "__main__":
    key = jax.random.PRNGKey(0)
    k = jax.random.split(key, 8)

    # 1) Primary case: aligned spatial extent (hw % 128 == 0), B = 2.
    B, C, H, W = 2, 4, 16, 16
    x1 = jax.random.normal(k[0], (B, C, H, W), dtype=jnp.float32)
    t1 = jax.random.uniform(k[1], (B, C, H, W), dtype=jnp.float32)
    o1 = jax.block_until_ready(triangle_loss(x1, t1))
    r1 = triangle_loss_ref(x1, t1)
    assert o1.shape == (C,)
    assert jnp.allclose(o1, r1, rtol=1e-5, atol=1e-5), (o1, r1)

    # 2) Ragged spatial extent (exercises the inert-pad tail path).
    x2 = jax.random.normal(k[2], (2, 3, 10, 10), dtype=jnp.float32)
    t2 = jax.random.uniform(k[3], (2, 3, 10, 10), dtype=jnp.float32)
    o2 = jax.block_until_ready(triangle_loss(x2, t2))
    r2 = triangle_loss_ref(x2, t2)
    assert o2.shape == (3,)
    assert jnp.allclose(o2, r2, rtol=1e-5, atol=1e-5), (o2, r2)

    # 3) Multi-step reduction + 2-way spatial split: a small block budget forces
    #    TR=8, NR=4 -> NSPLIT=2, NR_inner=2 (exercises init/accumulate/finalize
    #    and the (parallel, parallel, arbitrary) grid); B=1 for odd-batch path.
    x3 = jax.random.normal(k[4], (1, 4, 64, 64), dtype=jnp.float32)
    t3 = jax.random.uniform(k[5], (1, 4, 64, 64), dtype=jnp.float32)
    o3 = jax.block_until_ready(triangle_loss(x3, t3, target_block_bytes=16 * 1024))
    r3 = triangle_loss_ref(x3, t3)
    assert jnp.allclose(o3, r3, rtol=1e-5, atol=1e-5), (o3, r3)

    # 4) Same inputs with the default budget: exercises the odd-batch whole-slab
    #    split (TR halved so both v7x cores get work: NR=2, NSPLIT=2).
    o4 = jax.block_until_ready(triangle_loss(x3, t3))
    assert jnp.allclose(o4, r3, rtol=1e-5, atol=1e-5), (o4, r3)

    # 5) bf16 inputs (exercises dtype-aware tiling / 16-row sublane packing).
    x5 = jax.random.normal(k[6], (2, 4, 16, 16), dtype=jnp.float32).astype(jnp.bfloat16)
    t5 = jax.random.uniform(k[7], (2, 4, 16, 16), dtype=jnp.float32).astype(jnp.bfloat16)
    o5 = jax.block_until_ready(triangle_loss(x5, t5))
    r5 = triangle_loss_ref(x5, t5)
    assert jnp.allclose(o5, r5, rtol=1e-4, atol=1e-4), (o5, r5)

    print("KERNEL_OK")
</pallas_src>

<mosaic_0001>
module attributes {stable_mosaic.version = 11 : i64} {
  func.func @_triangle_partials_kernel(%arg0: i32, %arg1: i32, %arg2: i32, %arg3: memref<1x4x2x128xf32, #tpu.memory_space<vmem>>, %arg4: memref<1x4x2x128xf32, #tpu.memory_space<vmem>>, %arg5: memref<1x1x4x4xf32, #tpu.memory_space<vmem>>, %arg6: memref<4x128xf32, #tpu.memory_space<vmem>>, %arg7: memref<4x128xf32, #tpu.memory_space<vmem>>, %arg8: memref<4x128xf32, #tpu.memory_space<vmem>>, %arg9: memref<4x128xf32, #tpu.memory_space<vmem>>) attributes {dimension_semantics = [#tpu.dimension_semantics<parallel>, #tpu.dimension_semantics<parallel>, #tpu.dimension_semantics<arbitrary>], iteration_bounds = array<i64: 2, 1, 1>, scalar_prefetch = 0 : i64, scratch_operands = 4 : i64, tpu.core_type = #tpu.core_type<tc>, window_params = [{transform_indices = @transform_0, window_bounds = array<i64: 1, 4, 2, 128>}, {transform_indices = @transform_1, window_bounds = array<i64: 1, 4, 2, 128>}, {transform_indices = @transform_2, window_bounds = array<i64: 1, 1, 4, 4>}]} {
    %c0 = arith.constant 0 : index
    %c0_0 = arith.constant 0 : index
    %c0_1 = arith.constant 0 : index
    %c0_2 = arith.constant 0 : index
    %0 = vector.load %arg3[%c0, %c0_0, %c0_1, %c0_2] : memref<1x4x2x128xf32, #tpu.memory_space<vmem>>, vector<1x4x2x128xf32>
    %1 = vector.shape_cast %0 : vector<1x4x2x128xf32> to vector<4x2x128xf32>
    %c0_3 = arith.constant 0 : index
    %c0_4 = arith.constant 0 : index
    %c0_5 = arith.constant 0 : index
    %c0_6 = arith.constant 0 : index
    %2 = vector.load %arg4[%c0_3, %c0_4, %c0_5, %c0_6] : memref<1x4x2x128xf32, #tpu.memory_space<vmem>>, vector<1x4x2x128xf32>
    %3 = vector.shape_cast %2 : vector<1x4x2x128xf32> to vector<4x2x128xf32>
    %4 = math.absf %1 : vector<4x2x128xf32>
    %cst = arith.constant 0.000000e+00 : f32
    %5 = vector.broadcast %cst : f32 to vector<4x2x128xf32>
    %6 = arith.subf %5, %4 : vector<4x2x128xf32>
    %7 = math.exp %6 : vector<4x2x128xf32>
    %cst_7 = arith.constant 1.000000e+00 : f32
    %8 = vector.broadcast %cst_7 : f32 to vector<4x2x128xf32>
    %9 = arith.addf %8, %7 : vector<4x2x128xf32>
    %cst_8 = arith.constant 1.000000e+00 : f32
    %10 = vector.broadcast %cst_8 : f32 to vector<4x2x128xf32>
    %11 = arith.divf %10, %9 : vector<4x2x128xf32>
    %cst_9 = arith.constant 0.000000e+00 : f32
    %12 = vector.broadcast %cst_9 : f32 to vector<4x2x128xf32>
    %13 = arith.cmpf oge, %1, %12 : vector<4x2x128xf32>
    %14 = arith.mulf %7, %11 : vector<4x2x128xf32>
    %15 = arith.select %13, %11, %14 : vector<4x2x128xi1>, vector<4x2x128xf32>
    %cst_10 = arith.constant 0.000000e+00 : f32
    %16 = vector.broadcast %cst_10 : f32 to vector<4x2x128xf32>
    %17 = arith.maximumf %1, %16 : vector<4x2x128xf32>
    %18 = arith.mulf %1, %3 : vector<4x2x128xf32>
    %19 = arith.subf %17, %18 : vector<4x2x128xf32>
    %20 = math.log1p %7 : vector<4x2x128xf32>
    %21 = arith.addf %19, %20 : vector<4x2x128xf32>
    %22 = arith.subf %15, %3 : vector<4x2x128xf32>
    %23 = arith.mulf %15, %3 : vector<4x2x128xf32>
    %cst_11 = arith.constant dense<0.000000e+00> : vector<4x128xf32>
    %24 = vector.multi_reduction <add>, %23, %cst_11 [1] : vector<4x2x128xf32> to vector<4x128xf32>
    %25 = arith.addf %15, %3 : vector<4x2x128xf32>
    %cst_12 = arith.constant dense<0.000000e+00> : vector<4x128xf32>
    %26 = vector.multi_reduction <add>, %25, %cst_12 [1] : vector<4x2x128xf32> to vector<4x128xf32>
    %cst_13 = arith.constant dense<0.000000e+00> : vector<4x128xf32>
    %27 = vector.multi_reduction <add>, %21, %cst_13 [1] : vector<4x2x128xf32> to vector<4x128xf32>
    %28 = arith.mulf %22, %22 : vector<4x2x128xf32>
    %cst_14 = arith.constant dense<0.000000e+00> : vector<4x128xf32>
    %29 = vector.multi_reduction <add>, %28, %cst_14 [1] : vector<4x2x128xf32> to vector<4x128xf32>
    %c0_i32 = arith.constant 0 : i32
    %30 = arith.cmpi eq, %arg2, %c0_i32 : i32
    %31 = arith.extui %30 : i1 to i32
    %c0_i32_15 = arith.constant 0 : i32
    %32 = arith.cmpi ne, %31, %c0_i32_15 : i32
    scf.if %32 {
      %c0_20 = arith.constant 0 : index
      %c0_21 = arith.constant 0 : index
      %39 = vector.load %arg6[%c0_20, %c0_21] : memref<4x128xf32, #tpu.memory_space<vmem>>, vector<4x128xf32>
      tpu.vector_store %arg6[%c0_20, %c0_21], %24 {strides = array<i32>} : memref<4x128xf32, #tpu.memory_space<vmem>>, vector<4x128xf32>,
      %c0_22 = arith.constant 0 : index
      %c0_23 = arith.constant 0 : index
      %40 = vector.load %arg7[%c0_22, %c0_23] : memref<4x128xf32, #tpu.memory_space<vmem>>, vector<4x128xf32>
      tpu.vector_store %arg7[%c0_22, %c0_23], %26 {strides = array<i32>} : memref<4x128xf32, #tpu.memory_space<vmem>>, vector<4x128xf32>,
      %c0_24 = arith.constant 0 : index
      %c0_25 = arith.constant 0 : index
      %41 = vector.load %arg8[%c0_24, %c0_25] : memref<4x128xf32, #tpu.memory_space<vmem>>, vector<4x128xf32>
      tpu.vector_store %arg8[%c0_24, %c0_25], %27 {strides = array<i32>} : memref<4x128xf32, #tpu.memory_space<vmem>>, vector<4x128xf32>,
      %c0_26 = arith.constant 0 : index
      %c0_27 = arith.constant 0 : index
      %42 = vector.load %arg9[%c0_26, %c0_27] : memref<4x128xf32, #tpu.memory_space<vmem>>, vector<4x128xf32>
      tpu.vector_store %arg9[%c0_26, %c0_27], %29 {strides = array<i32>} : memref<4x128xf32, #tpu.memory_space<vmem>>, vector<4x128xf32>,
    } else {
    }
    %c0_i32_16 = arith.constant 0 : i32
    %33 = arith.cmpi sgt, %arg2, %c0_i32_16 : i32
    %34 = arith.extui %33 : i1 to i32
    %c0_i32_17 = arith.constant 0 : i32
    %35 = arith.cmpi ne, %34, %c0_i32_17 : i32
    scf.if %35 {
      %c0_20 = arith.constant 0 : index
      %c0_21 = arith.constant 0 : index
      %39 = vector.load %arg6[%c0_20, %c0_21] : memref<4x128xf32, #tpu.memory_space<vmem>>, vector<4x128xf32>
      %40 = arith.addf %39, %24 : vector<4x128xf32>
      %c0_22 = arith.constant 0 : index
      %c0_23 = arith.constant 0 : index
      %41 = vector.load %arg6[%c0_22, %c0_23] : memref<4x128xf32, #tpu.memory_space<vmem>>, vector<4x128xf32>
      tpu.vector_store %arg6[%c0_22, %c0_23], %40 {strides = array<i32>} : memref<4x128xf32, #tpu.memory_space<vmem>>, vector<4x128xf32>,
      %c0_24 = arith.constant 0 : index
      %c0_25 = arith.constant 0 : index
      %42 = vector.load %arg7[%c0_24, %c0_25] : memref<4x128xf32, #tpu.memory_space<vmem>>, vector<4x128xf32>
      %43 = arith.addf %42, %26 : vector<4x128xf32>
      %c0_26 = arith.constant 0 : index
      %c0_27 = arith.constant 0 : index
      %44 = vector.load %arg7[%c0_26, %c0_27] : memref<4x128xf32, #tpu.memory_space<vmem>>, vector<4x128xf32>
      tpu.vector_store %arg7[%c0_26, %c0_27], %43 {strides = array<i32>} : memref<4x128xf32, #tpu.memory_space<vmem>>, vector<4x128xf32>,
      %c0_28 = arith.constant 0 : index
      %c0_29 = arith.constant 0 : index
      %45 = vector.load %arg8[%c0_28, %c0_29] : memref<4x128xf32, #tpu.memory_space<vmem>>, vector<4x128xf32>
      %46 = arith.addf %45, %27 : vector<4x128xf32>
      %c0_30 = arith.constant 0 : index
      %c0_31 = arith.constant 0 : index
      %47 = vector.load %arg8[%c0_30, %c0_31] : memref<4x128xf32, #tpu.memory_space<vmem>>, vector<4x128xf32>
      tpu.vector_store %arg8[%c0_30, %c0_31], %46 {strides = array<i32>} : memref<4x128xf32, #tpu.memory_space<vmem>>, vector<4x128xf32>,
      %c0_32 = arith.constant 0 : index
      %c0_33 = arith.constant 0 : index
      %48 = vector.load %arg9[%c0_32, %c0_33] : memref<4x128xf32, #tpu.memory_space<vmem>>, vector<4x128xf32>
      %49 = arith.addf %48, %29 : vector<4x128xf32>
      %c0_34 = arith.constant 0 : index
      %c0_35 = arith.constant 0 : index
      %50 = vector.load %arg9[%c0_34, %c0_35] : memref<4x128xf32, #tpu.memory_space<vmem>>, vector<4x128xf32>
      tpu.vector_store %arg9[%c0_34, %c0_35], %49 {strides = array<i32>} : memref<4x128xf32, #tpu.memory_space<vmem>>, vector<4x128xf32>,
    } else {
    }
    %c0_i32_18 = arith.constant 0 : i32
    %36 = arith.cmpi eq, %arg2, %c0_i32_18 : i32
    %37 = arith.extui %36 : i1 to i32
    %c0_i32_19 = arith.constant 0 : i32
    %38 = arith.cmpi ne, %37, %c0_i32_19 : i32
    scf.if %38 {
      %c0_20 = arith.constant 0 : index
      %c0_21 = arith.constant 0 : index
      %39 = vector.load %arg6[%c0_20, %c0_21] : memref<4x128xf32, #tpu.memory_space<vmem>>, vector<4x128xf32>
      %cst_22 = arith.constant dense<0.000000e+00> : vector<4xf32>
      %40 = vector.multi_reduction <add>, %39, %cst_22 [1] : vector<4x128xf32> to vector<4xf32>
      %c0_23 = arith.constant 0 : index
      %c0_24 = arith.constant 0 : index
      %41 = vector.load %arg7[%c0_23, %c0_24] : memref<4x128xf32, #tpu.memory_space<vmem>>, vector<4x128xf32>
      %cst_25 = arith.constant dense<0.000000e+00> : vector<4xf32>
      %42 = vector.multi_reduction <add>, %41, %cst_25 [1] : vector<4x128xf32> to vector<4xf32>
      %c0_26 = arith.constant 0 : index
      %c0_27 = arith.constant 0 : index
      %43 = vector.load %arg8[%c0_26, %c0_27] : memref<4x128xf32, #tpu.memory_space<vmem>>, vector<4x128xf32>
      %44 = vector.shape_cast %43 : vector<4x128xf32> to vector<1x4x128xf32>
      %cst_28 = arith.constant dense<0.000000e+00> : vector<1xf32>
      %45 = vector.multi_reduction <add>, %44, %cst_28 [1, 2] : vector<1x4x128xf32> to vector<1xf32>
      %46 = vector.shape_cast %45 : vector<1xf32> to vector<1x1x1xf32>
      %47 = vector.extract %46[0, 0, 0] : f32 from vector<1x1x1xf32>
      %c0_29 = arith.constant 0 : index
      %c0_30 = arith.constant 0 : index
      %48 = vector.load %arg9[%c0_29, %c0_30] : memref<4x128xf32, #tpu.memory_space<vmem>>, vector<4x128xf32>
      %49 = vector.shape_cast %48 : vector<4x128xf32> to vector<1x4x128xf32>
      %cst_31 = arith.constant dense<0.000000e+00> : vector<1xf32>
      %50 = vector.multi_reduction <add>, %49, %cst_31 [1, 2] : vector<1x4x128xf32> to vector<1xf32>
      %51 = vector.shape_cast %50 : vector<1xf32> to vector<1x1x1xf32>
      %52 = vector.extract %51[0, 0, 0] : f32 from vector<1x1x1xf32>
      %cst_32 = arith.constant 0.000000e+00 : f32
      %53 = vector.broadcast %cst_32 : f32 to vector<1x4xf32>
      %54 = vector.shape_cast %40 : vector<4xf32> to vector<1x4xf32>
      %c0_33 = arith.constant 0 : index
      %c0_34 = arith.constant 0 : index
      %c0_35 = arith.constant 0 : index
      %c0_36 = arith.constant 0 : index
      %55 = vector.load %arg5[%c0_33, %c0_34, %c0_35, %c0_36] : memref<1x1x4x4xf32, #tpu.memory_space<vmem>>, vector<1x1x1x4xf32>
      %56 = vector.shape_cast %55 : vector<1x1x1x4xf32> to vector<1x4xf32>
      %57 = vector.shape_cast %54 : vector<1x4xf32> to vector<1x1x1x4xf32>
      tpu.vector_store %arg5[%c0_33, %c0_34, %c0_35, %c0_36], %57 {strides = array<i32>} : memref<1x1x4x4xf32, #tpu.memory_space<vmem>>, vector<1x1x1x4xf32>,
      %58 = vector.shape_cast %42 : vector<4xf32> to vector<1x4xf32>
      %c0_37 = arith.constant 0 : index
      %c0_38 = arith.constant 0 : index
      %c1 = arith.constant 1 : index
      %c0_39 = arith.constant 0 : index
      %59 = vector.load %arg5[%c0_37, %c0_38, %c1, %c0_39] : memref<1x1x4x4xf32, #tpu.memory_space<vmem>>, vector<1x1x1x4xf32>
      %60 = vector.shape_cast %59 : vector<1x1x1x4xf32> to vector<1x4xf32>
      %61 = vector.shape_cast %58 : vector<1x4xf32> to vector<1x1x1x4xf32>
      tpu.vector_store %arg5[%c0_37, %c0_38, %c1, %c0_39], %61 {strides = array<i32>} : memref<1x1x4x4xf32, #tpu.memory_space<vmem>>, vector<1x1x1x4xf32>,
      %62 = vector.broadcast %47 : f32 to vector<1x4xf32>
      %63 = arith.addf %53, %62 : vector<1x4xf32>
      %c0_40 = arith.constant 0 : index
      %c0_41 = arith.constant 0 : index
      %c2 = arith.constant 2 : index
      %c0_42 = arith.constant 0 : index
      %64 = vector.load %arg5[%c0_40, %c0_41, %c2, %c0_42] : memref<1x1x4x4xf32, #tpu.memory_space<vmem>>, vector<1x1x1x4xf32>
      %65 = vector.shape_cast %64 : vector<1x1x1x4xf32> to vector<1x4xf32>
      %66 = vector.shape_cast %63 : vector<1x4xf32> to vector<1x1x1x4xf32>
      tpu.vector_store %arg5[%c0_40, %c0_41, %c2, %c0_42], %66 {strides = array<i32>} : memref<1x1x4x4xf32, #tpu.memory_space<vmem>>, vector<1x1x1x4xf32>,
      %67 = vector.broadcast %52 : f32 to vector<1x4xf32>
      %68 = arith.addf %53, %67 : vector<1x4xf32>
      %c0_43 = arith.constant 0 : index
      %c0_44 = arith.constant 0 : index
      %c3 = arith.constant 3 : index
      %c0_45 = arith.constant 0 : index
      %69 = vector.load %arg5[%c0_43, %c0_44, %c3, %c0_45] : memref<1x1x4x4xf32, #tpu.memory_space<vmem>>, vector<1x1x1x4xf32>
      %70 = vector.shape_cast %69 : vector<1x1x1x4xf32> to vector<1x4xf32>
      %71 = vector.shape_cast %68 : vector<1x4xf32> to vector<1x1x1x4xf32>
      tpu.vector_store %arg5[%c0_43, %c0_44, %c3, %c0_45], %71 {strides = array<i32>} : memref<1x1x4x4xf32, #tpu.memory_space<vmem>>, vector<1x1x1x4xf32>,
    } else {
    }
    return
  }
  func.func @transform_0(%arg0: i32, %arg1: i32, %arg2: i32) -> (i32, i32, i32, i32) {
    %c1_i32 = arith.constant 1 : i32
    %0 = arith.muli %arg1, %c1_i32 : i32
    %1 = arith.addi %0, %arg2 : i32
    %c0_i32 = arith.constant 0 : i32
    %c0_i32_0 = arith.constant 0 : i32
    %c0_i32_1 = arith.constant 0 : i32
    return %arg0, %c0_i32, %1, %c0_i32_0 : i32, i32, i32, i32
  }
  func.func @transform_1(%arg0: i32, %arg1: i32, %arg2: i32) -> (i32, i32, i32, i32) {
    %c1_i32 = arith.constant 1 : i32
    %0 = arith.muli %arg1, %c1_i32 : i32
    %1 = arith.addi %0, %arg2 : i32
    %c0_i32 = arith.constant 0 : i32
    %c0_i32_0 = arith.constant 0 : i32
    %c0_i32_1 = arith.constant 0 : i32
    return %arg0, %c0_i32, %1, %c0_i32_0 : i32, i32, i32, i32
  }
  func.func @transform_2(%arg0: i32, %arg1: i32, %arg2: i32) -> (i32, i32, i32, i32) {
    %c0_i32 = arith.constant 0 : i32
    %c0_i32_0 = arith.constant 0 : i32
    %c0_i32_1 = arith.constant 0 : i32
    return %arg0, %arg1, %c0_i32, %c0_i32_0 : i32, i32, i32, i32
  }
}

</mosaic_0001>

<bundles_post_ra>
// kernel: tpu_custom_call.1
= control target key start
LH: loop header
LB: loop body
LE: loop exit
PB: predicated region body
PF: predicated region fallthrough
CT: control target
= control target key end

     0   :  { %7 = vsyncpa [#allocation7], 0  ;;  %s1493_s0 = inlined_call_operand.hbm [shape: f32[2,4,2,128], index: 0, kind: input, shape index: {}]   ;;  %s1494_s1 = inlined_call_operand.hbm [shape: f32[2,4,2,128], index: 1, kind: input, shape index: {}]   ;;  %s1495_s2 = inlined_call_operand.hbm [shape: f32[2,1,4,4], index: 2, kind: output, shape index: {}]  }
   0x1   :  { %9 = vsyncpa [#allocation7 + $0x1], 0 }
   0x2   :  { %10 = vsyncpa [#allocation10], 0 }
   0x3   :  { %12 = vsyncpa [#allocation10 + $0x1], 0 }
   0x4   :  { %13 = vsyncpa [#allocation8], 0 }
   0x5   :  { %15 = vsyncpa [#allocation8 + $0x1], 0  ;;  %s1077_s9 = smov 0   ;;  %s1079_s10 = smov 0  }
   0x6   :  { %s1081_s11 = smov 0   ;;  %s1083_s12 = smov 0  }
   0x7   :  { %s1085_s13 = smov 0   ;;  %s1087_s14 = smov 0  }
   0x8 LB: > { %s795_s15 = sadd.s32 4294967295, %s1058_s14   ;;  %s796_s16 = sadd.s32 4294967294, %s1058_s14   ;;  %s1058_s14 = sphi %s1087_s14, %s21_s14   ;;  %s1054_s13 = sphi %s1085_s13, %s1525_s13   ;;  %s1050_s12 = sphi %s1083_s12, %s1524_s12   ;;  %s1046_s11 = sphi %s1081_s11, %s1523_s11   ;;  %s1042_s10 = sphi %s1079_s10, %s1522_s10   ;;  %s1038_s9 = sphi %s1077_s9, %s1521_s9  }
   0x9   : > { %s40_s17 = sadd.s32 1, %s1054_s13  ;;  %s51_s18 = sadd.s32 1, %s1046_s11 }
   0xa   : > { %p42_p0 = scmp.ge.s32.totalorder %s40_s17, 2  ;;  %p58_p1 = scmp.ne.s32.totalorder %s1046_s11, %s1042_s10 }
   0xb   : > { %p59_p2 = scmp.eq.s32.totalorder %s1058_s14, 0  ;;  %p64_p3 = scmp.ne.s32.totalorder %s1042_s10, %s1038_s9 }
   0xc   : > { %s1527_s17 = smov (%p42_p0, %s40_s17), 0  ;;  %p65_p5 = scmp.eq.s32.totalorder %s795_s15, 0 }
   0xd   : > { %p1118_p4 = por %p59_p2, %p58_p1  ;;  %s46_s20 = ssub.s32 %s1054_s13, %s1527_s17 }
   0xe   : > { %p120_p6 = scmp.eq.s32.totalorder %s795_s15, 1  ;;  %p49_p7 = scmp.eq.s32.totalorder %s46_s20, 0 }
   0xf   : > { %p1124_p8 = por %p65_p5, %p64_p3  ;;  %p126_p10 = scmp.eq.s32.totalorder %s796_s16, 1 }
  0x10   : > { %p1128_p9 = por %p120_p6, %p58_p1  ;;  %p798_p12 = scmp.ge.s32.totalorder %s1058_s14, 2 }
  0x11   : > { %s1133_s23 = scalar_select %p49_p7, %s1046_s11, %s51_s18  }
  0x12   : > { %p1135_p11 = por %p126_p10, %p64_p3  ;;  %p836_p13 = scmp.lt.s32.totalorder %s1058_s14, 2 }
  0x13   : > { %s1142_s25 = sand.u32 1, %s1046_s11   ;;  %s813_s27 = sshll.u32 %s1054_s13, 3 }
  0x14   : > { %s799_s26 = sshll.u32 %s1142_s25, 3  ;;  %s157_s30 = scalar_lea.hbm %s1493_s0, %s813_s27 }
  0x15   : > { %s150_s3 = scalar_lea.vmem [#allocation6], %s799_s26  ;;  %s158_s5 = sshll.u32 %s157_s30, 4  ;;  %s159_s5 = int_to_ptr.hbm [resolvable:$true] %s158_s5 }
  0x16   : > { %s160_s4 = sshll.u32 %s150_s3, 4  ;;  %p1151_p0 = pnand %p836_p13, %p1118_p4  ;;  %s161_s4 = int_to_ptr.vmem [resolvable:$true] %s160_s4 }
  0x17   : > { %p805_p1 = scmp.ge.s32.totalorder %s1058_s14, 1  ;;  %s147_s7 = scalar_lea.sflag [#allocation7], %s1142_s25 }
  0x18   : > { %s1060_s8 = smov 32   ;;  %s1061_s15 = smov 2  }
  0x19   : > { %828 = dma.hbm_to_vmem [thread:$0]  (!%p1151_p0), %s159_s5, 128, %s161_s4, %s147_s7, %s1060_s8, %s1060_s8, %s1061_s15  }
  0x1a   : > { %p192_p2 = scmp.lt.s32.totalorder %s1058_s14, 3  ;;  %s181_s20 = scalar_lea.hbm %s1494_s1, %s813_s27 }
  0x1b   : > { %s182_s28 = sshll.u32 %s181_s20, 4  ;;  %s174_s19 = scalar_lea.vmem [#allocation9], %s799_s26  ;;  %s183_s28 = int_to_ptr.hbm [resolvable:$true] %s182_s28 }
  0x1c   : > { %p193_p3 = pnand %p805_p1, %p192_p2  ;;  %s184_s29 = sshll.u32 %s174_s19, 4  ;;  %s185_s29 = int_to_ptr.vmem [resolvable:$true] %s184_s29 }
  0x1d   : > { %s171_s30 = scalar_lea.sflag [#allocation10], %s1142_s25  ;;  %s1167_s3 = sand.u32 (!%p193_p3), 1, %s1042_s10  }
  0x1e   : > { %831 = dma.hbm_to_vmem [thread:$0]  (!%p1151_p0), %s183_s28, 128, %s185_s29, %s171_s30, %s1060_s8, %s1060_s8, %s1061_s15  }
  0x1f   : > { %196 = sbr.rel (%p193_p3) target bundleno = 300 (0x12c), region = 28  ;;  %s806_s4 = sshll.u32 (!%p193_p3), %s1167_s3, 3 }
  0x20   : > { %s199_s5 = scalar_lea.sflag (!%p193_p3), [#allocation7], %s1167_s3  ;;  %s202_s7 = scalar_lea.vmem (!%p193_p3), [#allocation6], %s806_s4 }
  0x24   : > { %1025 = dma.done.wait (%p1124_p8), %s199_s5, 128  }
  0x25   : > { %1027 = vsyncadd (%p1124_p8), %s199_s5, 4294967168  ;;  %s209_s25 = scalar_lea.sflag [#allocation10], %s1167_s3  ;;  %s212_s26 = scalar_lea.vmem [#allocation9], %s806_s4 }
  0x26   : > { %1029 = dma.done.wait (%p1124_p8), %s209_s25, 128  }
  0x27   : > { %1031 = vsyncadd (%p1124_p8), %s209_s25, 4294967168  ;;  %v1180_v0 = vld [vmem:[%s202_s7] sm:$0x3]  ;;  %v1182_v1 = vld [vmem:[%s202_s7 + $0x2] sm:$0x3]  ;;  %vm401_vm0 = vcmask 1041408  }
  0x28   : > { %v1184_v2 = vld [vmem:[%s202_s7 + $0x4] sm:$0x3]  ;;  %v1186_v3 = vld [vmem:[%s202_s7 + $0x6] sm:$0x3]  ;;  %v249_v4 = vand.u32 2147483647, %v1180_v0 }
  0x29   : > { %v250_v5 = vand.u32 2147483647, %v1182_v1  ;;  %v251_v6 = vand.u32 2147483647, %v1184_v2  ;;  %v252_v7 = vand.u32 2147483647, %v1186_v3 }
  0x2a   : > { %v253_v8 = vsub.f32 0.0, %v249_v4  ;;  %v1192_v16 = vld [vmem:[%s212_s26] sm:$0x3]  ;;  %v1194_v17 = vld [vmem:[%s212_s26 + $0x2] sm:$0x3]  ;;  %v341_v19 = vmax.f32 %v1180_v0, 0.0 }
  0x2b   : > { %v254_v9 = vsub.f32 0.0, %v250_v5  ;;  %v255_v10 = vsub.f32 0.0, %v251_v6  ;;  %v256_v11 = vsub.f32 0.0, %v252_v7  ;;  %v1196_v18 = vld [vmem:[%s212_s26 + $0x4] sm:$0x3]  ;;  %v345_v20 = vmul.f32 %v1192_v16, %v1180_v0  ;;  %s808_s21 = sshll.u32 %s1167_s3, 2 }
  0x2c   : > { %v257_v12 = vmul.f32 1.442695, %v253_v8  ;;  %v1201_v21 = vld [vmem:[%s212_s26 + $0x6] sm:$0x3]  ;;  %v342_v22 = vmax.f32 %v1182_v1, 0.0  ;;  %v343_v23 = vmax.f32 %v1184_v2, 0.0  ;;  %v346_v24 = vmul.f32 %v1194_v17, %v1182_v1 }
  0x2d   : > { %v259_v13 = vmul.f32 1.442695, %v254_v9  ;;  %v261_v14 = vmul.f32 1.442695, %v255_v10  ;;  %v263_v15 = vmul.f32 1.442695, %v256_v11  ;;  %v347_v25 = vmul.f32 %v1196_v18, %v1184_v2 }
  0x2e   : > { %888 = vpow2.f32 %v257_v12  ;;  %v344_v27 = vmax.f32 %v1186_v3, 0.0  ;;  %v348_v30 = vmul.f32 %v1201_v21, %v1186_v3  ;;  %v349_v31 = vsub.f32 %v341_v19, %v345_v20  ;;  %s238_s27 = scalar_lea.vmem [#allocation11], %s808_s21  ;;  %s810_s8 = sshll.u32 %s1050_s12, 2 }
  0x2f   : > { %890 = vpow2.f32 %v259_v13  ;;  %v1225_v35 = vsub.f32 %v342_v22, %v346_v24  ;;  %v1227_v36 = vsub.f32 %v343_v23, %v347_v25  ;;  %vm530_vm15 = vcmask 1041409   ;;  %s679_s18 = scalar_lea.hbm %s1495_s2, %s810_s8  ;;  %s681_s20 = sshll.u32 %s238_s27, 4  ;;  %s682_s20 = int_to_ptr.vmem [resolvable:$true] %s681_s20 }
  0x30   : > { %892 = vpow2.f32 %v261_v14  ;;  %v1243_v45 = vsub.f32 %v344_v27, %v348_v30  ;;  %s683_s28 = sshll.u32 %s679_s18, 4  ;;  %s668_s29 = scalar_lea.sflag [#allocation8], %s1167_s3  ;;  %s684_s28 = int_to_ptr.hbm [resolvable:$true] %s683_s28 }
  0x31   : > { %894 = vpow2.f32 %v263_v15  ;;  %s986_s30 = sshra.s32 %s684_s28, 4  ;;  %s992_s7 = scalar_lea.hbm %s1495_s2, 8  ;;  %s987_s30 = int_to_ptr.hbm [resolvable:$true] %s986_s30 }
  0x32   : > { %s988_s4 = scalar_lea.hbm %s987_s30, 4  ;;  %p993_p7 = scmp.lt.s32.totalorder %s987_s30, %s1495_s2 }
  0x33   : > { %p989_p4 = scmp.ne.s32.totalorder %s987_s30, %s988_s4  ;;  %p994_p8 = scmp.lt.s32.totalorder %s992_s7, %s988_s4 }
  0x34   : > { %v1209_v26 = vpop.eup %888 }
  0x35   : > { %v1212_v28 = vpop.eup %890  ;;  %v1215_v29 = vadd.f32 1.0, %v1209_v26  ;;  %v356_v32 = vmul.f32 -0.5, %v1209_v26  ;;  %v359_v40 = vand.u32 2147483647, %v1209_v26  ;;  %p990_p5 = pnand %p989_p4, %p1128_p9  ;;  %p995_p10 = por %p994_p8, %p993_p7 }
  0x36   : > { %v1220_v33 = vpop.eup %892  ;;  %v1223_v34 = vadd.f32 1.0, %v1212_v28  ;;  %v365_v37 = vmul.f32 -0.5, %v1212_v28  ;;  %v368_v41 = vand.u32 2147483647, %v1212_v28 }
  0x37   : > { %v1230_v38 = vpop.eup %894  ;;  %v1233_v39 = vadd.f32 1.0, %v1220_v33  ;;  %896 = vlog2.f32 %v1215_v29  ;;  %v357_v43 = vadd.f32 1.0, %v356_v32  ;;  %v374_v46 = vmul.f32 -0.5, %v1220_v33  ;;  %p991_p6 = pneg %p990_p5 }
  0x38   : > { %v1239_v42 = vadd.f32 1.0, %v1230_v38  ;;  %898 = vrcp.f32 %v1223_v34  ;;  %v366_v44 = vadd.f32 1.0, %v365_v37  ;;  %v377_v47 = vand.u32 2147483647, %v1220_v33 }
  0x39   : > { %900 = vrcp.f32 %v1233_v39  ;;  %v383_v48 = vmul.f32 -0.5, %v1230_v38  ;;  %v386_v49 = vand.u32 2147483647, %v1230_v38  ;;  %vm1250_vm1 = vcmp.lt.f32.partialorder %v359_v40, 0.0004427343  ;;  %p996_p13 = pnand %p995_p10, %p991_p6 }
  0x3a   : > { %902 = vrcp.f32 %v1239_v42  ;;  %vm1255_vm2 = vcmp.lt.f32.partialorder %v368_v41, 0.0004427343  ;;  %v375_v52 = vadd.f32 1.0, %v374_v46  ;;  %v358_v53 = vmul.f32 %v1209_v26, %v357_v43 }
  0x3b   : > { %904 = vlog2.f32 %v1223_v34  ;;  %v367_v54 = vmul.f32 %v1212_v28, %v366_v44  ;;  %v384_v55 = vadd.f32 1.0, %v383_v48  ;;  %vm1262_vm3 = vcmp.lt.f32.partialorder %v377_v47, 0.0004427343 }
  0x3c   : > { %906 = vlog2.f32 %v1233_v39  ;;  %vm1267_vm4 = vcmp.lt.f32.partialorder %v386_v49, 0.0004427343  ;;  %v280_v59 = vand.u32 2147483648, %v1215_v29  ;;  %v376_v62 = vmul.f32 %v1220_v33, %v375_v52 }
  0x3d   : > { %v897_v56 = vpop.eup %896  ;;  %908 = vlog2.f32 %v1239_v42  ;;  %v278_v63 = vand.u32 2147483647, %v1215_v29  ;;  %v385_v5 = vmul.f32 %v1230_v38, %v384_v55  ;;  %vm274_vm5 = vweird.f32 %v1215_v29 }
  0x3e   : > { %v1272_v60 = vpop.eup %898  ;;  %v355_v61 = vmul.f32 0.6931472, %v897_v56  ;;  %910 = vrcp.f32 %v1215_v29  ;;  %v1281_v6 = vor.u32 1.1754944e-38, %v280_v59  ;;  %vm289_vm6 = vweird.f32 %v1223_v34 }
  0x3f   : > { %v1277_v4 = vpop.eup %900  ;;  %v285_v7 = vmul.f32 %v1272_v60, %v1223_v34  ;;  %v293_v10 = vand.u32 2147483647, %v1223_v34  ;;  %v295_v11 = vand.u32 2147483648, %v1223_v34  ;;  %vm290_vm7 = vweird.f32 %v1272_v60 }
  0x40   : > { %v1286_v8 = vpop.eup %902  ;;  %v361_v9 = vsel %vm1250_vm1, %v358_v53, %v355_v61  ;;  %v300_v12 = vmul.f32 %v1277_v4, %v1233_v39  ;;  %vm304_vm8 = vweird.f32 %v1233_v39  ;;  %vm305_vm10 = vweird.f32 %v1277_v4  ;;  %vm1318_vm13 = vmor %vm289_vm6, %vm290_vm7 }
  0x41   : > { %v905_v13 = vpop.eup %904  ;;  %v389_v14 = vadd.f32 %v361_v9, %v349_v31  ;;  %v286_v15 = vsub.f32 1.0, %v285_v7  ;;  %vm1296_vm9 = vcmp.eq.f32.partialorder %v293_v10, 8.507059e+37  ;;  %v296_v31 = vor.u32 1.1754944e-38, %v295_v11  ;;  %vm1337_vm14 = vmor %vm304_vm8, %vm305_vm10 }
  0x42   : > { %v907_v19 = vpop.eup %906  ;;  %v364_v20 = vmul.f32 0.6931472, %v905_v13  ;;  %v301_v23 = vsub.f32 1.0, %v300_v12  ;;  %vm1305_vm11 = vcmp.eq.f32.partialorder %v278_v63, 8.507059e+37  ;;  %v308_v63 = vand.u32 2147483647, %v1233_v39 }
  0x43   : > { %v909_v24 = vpop.eup %908  ;;  %v373_v25 = vmul.f32 0.6931472, %v907_v19  ;;  %v462_v27 = vsel %vm401_vm0, %v389_v14, 0.0  ;;  %v287_v30 = vmul.f32 %v1272_v60, %v286_v15  ;;  %vm532_vm1 = vcmask 1042434  }
  0x44   : > { %v911_v32 = vpop.eup %910  ;;  %v370_v37 = vsel %vm1255_vm2, %v367_v54, %v364_v20  ;;  %v382_v40 = vmul.f32 0.6931472, %v909_v24  ;;  %v463_v41 = vrot.slane %v462_v27, 4  ;;  %v302_v44 = vmul.f32 %v1277_v4, %v301_v23 }
  0x45   : > { %v379_v46 = vsel %vm1262_vm3, %v376_v62, %v373_v25  ;;  %v390_v47 = vadd.f32 %v370_v37, %v1225_v35  ;;  %v270_v48 = vmul.f32 %v911_v32, %v1215_v29  ;;  %vm275_vm12 = vweird.f32 %v911_v32 }
  0x46   : > { %v388_v50 = vsel %vm1267_vm4, %v385_v5, %v382_v40  ;;  %v391_v51 = vadd.f32 %v379_v46, %v1227_v36  ;;  %v464_v52 = vadd.f32 %v463_v41, %v462_v27  ;;  %v288_v53 = vadd.f32 %v1272_v60, %v287_v30  ;;  %vm1346_vm2 = vmor %vm274_vm5, %vm275_vm12 }
  0x47   : > { %v392_v35 = vadd.f32 %v388_v50, %v1243_v45  ;;  %v469_v54 = vsel %vm401_vm0, %v390_v47, 0.0  ;;  %v271_v55 = vsub.f32 1.0, %v270_v48  ;;  %v303_v56 = vadd.f32 %v1277_v4, %v302_v44 }
  0x48   : > { %v465_v34 = vrot.slane %v464_v52, 2  ;;  %v470_v57 = vrot.slane %v469_v54, 4  ;;  %v476_v59 = vsel %vm401_vm0, %v391_v51, 0.0  ;;  %v292_v58 = vsel %vm1318_vm13, %v1272_v60, %v288_v53 }
  0x49   : > { %v477_v45 = vrot.slane %v476_v59, 4  ;;  %v483_v61 = vsel %vm401_vm0, %v392_v35, 0.0  ;;  %v272_v62 = vmul.f32 %v911_v32, %v271_v55  ;;  %v297_v10 = vsel %vm1296_vm9, %v296_v31, %v292_v58 }
  0x4a   : > { %v466_v5 = vadd.f32 %v465_v34, %v464_v52  ;;  %v471_v7 = vadd.f32 %v470_v57, %v469_v54  ;;  %v484_v9 = vrot.slane %v483_v61, 4  ;;  %vm329_vm3 = vcmp.ge.f32.partialorder %v1180_v0, 0.0 }
  0x4b   : > { %v478_v11 = vadd.f32 %v477_v45, %v476_v59  ;;  %vm534_vm4 = vcmask 1043459   ;;  %v273_v12 = vadd.f32 %v911_v32, %v272_v62  ;;  %v307_v13 = vsel %vm1337_vm14, %v1277_v4, %v303_v56 }
  0x4c   : > { %v310_v14 = vand.u32 2147483648, %v1233_v39  ;;  %v467_v15 = vrot.slane %v466_v5, 1  ;;  %v472_v29 = vrot.slane %v471_v7, 2  ;;  %v485_v19 = vadd.f32 %v484_v9, %v483_v61 }
  0x4d   : > { %v315_v20 = vmul.f32 %v1286_v8, %v1239_v42  ;;  %v479_v23 = vrot.slane %v478_v11, 2  ;;  %v277_v22 = vsel %vm1346_vm2, %v911_v32, %v273_v12  ;;  %vm309_vm5 = vcmp.eq.f32.partialorder %v308_v63, 8.507059e+37 }
  0x4e   : > { %v311_v24 = vor.u32 1.1754944e-38, %v310_v14  ;;  %v468_v25 = vadd.f32 %v467_v15, %v466_v5  ;;  %v473_v27 = vadd.f32 %v472_v29, %v471_v7  ;;  %v486_v30 = vrot.slane %v485_v19, 2 }
  0x4f   : > { %vm319_vm6 = vweird.f32 %v1239_v42  ;;  %v480_v4 = vadd.f32 %v479_v23, %v478_v11  ;;  %v282_v39 = vsel %vm1305_vm11, %v1281_v6, %v277_v22  ;;  %v316_v31 = vsub.f32 1.0, %v315_v20 }
  0x50   : > { %vm320_vm7 = vweird.f32 %v1286_v8  ;;  %v474_v37 = vrot.slane %v473_v27, 1  ;;  %v487_v40 = vadd.f32 %v486_v30, %v485_v19  ;;  %v323_v41 = vand.u32 2147483647, %v1239_v42 }
  0x51   : > { %v325_v32 = vand.u32 2147483648, %v1239_v42  ;;  %v481_v44 = vrot.slane %v480_v4, 1  ;;  %v312_v46 = vsel %vm309_vm5, %v311_v24, %v307_v13  ;;  %v317_v47 = vmul.f32 %v1286_v8, %v316_v31  ;;  %vm1372_vm9 = vmor %vm319_vm6, %vm320_vm7 }
  0x52   : > { %vm330_vm8 = vcmp.ge.f32.partialorder %v1182_v1, 0.0  ;;  %v475_v48 = vadd.f32 %v474_v37, %v473_v27  ;;  %v488_v49 = vrot.slane %v487_v40, 1  ;;  %vm331_vm10 = vcmp.ge.f32.partialorder %v1184_v2, 0.0 }
  0x53   : > { %v326_v43 = vor.u32 1.1754944e-38, %v325_v32  ;;  %v482_v50 = vadd.f32 %v481_v44, %v480_v4  ;;  %v318_v51 = vadd.f32 %v1286_v8, %v317_v47  ;;  %vm324_vm11 = vcmp.eq.f32.partialorder %v323_v41, 8.507059e+37 }
  0x54   : > { %v333_v52 = vmul.f32 %v1209_v26, %v282_v39  ;;  %v489_v53 = vadd.f32 %v488_v49, %v487_v40  ;;  %v551_v35 = vsel %vm530_vm15, %v475_v48, %v468_v25  ;;  %vm620_vm12 = vcmask 1043456  }
  0x55   : > { %v334_v54 = vmul.f32 %v1212_v28, %v297_v10  ;;  %v335_v42 = vmul.f32 %v1220_v33, %v312_v46  ;;  %v552_v55 = vsel %vm532_vm1, %v482_v50, %v551_v35  ;;  %v322_v56 = vsel %vm1372_vm9, %v1286_v8, %v318_v51 }
  0x56   : > { %vm332_vm13 = vcmp.ge.f32.partialorder %v1186_v3, 0.0  ;;  %v337_v34 = vsel %vm329_vm3, %v282_v39, %v333_v52  ;;  %v553_v26 = vsel %vm534_vm4, %v489_v53, %v552_v55  ;;  %v327_v57 = vsel %vm324_vm11, %v326_v43, %v322_v56 }
  0x57   : > { %v1392_v59 = vsel %vm330_vm8, %v297_v10, %v334_v54  ;;  %v1396_v28 = vsel %vm331_vm10, %v312_v46, %v335_v42  ;;  %555 = vst [vmem:[#allocation4] sm:$0xf] %v553_v26  ;;  %v336_v33 = vmul.f32 %v1230_v38, %v327_v57  ;;  %v393_v8 = vsub.f32 %v337_v34, %v1192_v16 }
  0x58   : > { %v394_v0 = vsub.f32 %v1392_v59, %v1194_v17  ;;  %v395_v3 = vsub.f32 %v1396_v28, %v1196_v18  ;;  %v397_v58 = vmul.f32 %v337_v34, %v1192_v16  ;;  %v398_v1 = vmul.f32 %v1392_v59, %v1194_v17 }
  0x59   : > { %v399_v2 = vmul.f32 %v1396_v28, %v1196_v18  ;;  %v1410_v36 = vadd.f32 %v337_v34, %v1192_v16  ;;  %v1412_v38 = vsel %vm332_vm13, %v327_v57, %v336_v33  ;;  %v490_v45 = vmul.f32 %v393_v8, %v393_v8 }
  0x5a   : > { %v491_v61 = vmul.f32 %v394_v0, %v394_v0  ;;  %v492_v62 = vmul.f32 %v395_v3, %v395_v3  ;;  %v396_v63 = vsub.f32 %v1412_v38, %v1201_v21  ;;  %v400_v5 = vmul.f32 %v1412_v38, %v1201_v21 }
  0x5b   : > { %v402_v7 = vsel %vm401_vm0, %v397_v58, 0.0  ;;  %v409_v9 = vsel %vm401_vm0, %v398_v1, 0.0  ;;  %v494_v60 = vsel %vm401_vm0, %v490_v45, 0.0  ;;  %v416_v20 = vsel %vm401_vm0, %v399_v2, 0.0 }
  0x5c   : > { %v501_v16 = vsel %vm401_vm0, %v491_v61, 0.0  ;;  %v508_v10 = vsel %vm401_vm0, %v492_v62, 0.0  ;;  %v403_v11 = vrot.slane %v402_v7, 4  ;;  %v493_v12 = vmul.f32 %v396_v63, %v396_v63 }
  0x5d   : > { %v495_v13 = vrot.slane %v494_v60, 4  ;;  %v502_v14 = vrot.slane %v501_v16, 4  ;;  %v509_v15 = vrot.slane %v508_v10, 4  ;;  %v410_v19 = vrot.slane %v409_v9, 4 }
  0x5e   : > { %v404_v29 = vadd.f32 %v403_v11, %v402_v7  ;;  %v423_v23 = vsel %vm401_vm0, %v400_v5, 0.0  ;;  %v628_v22 = vld [vmem:[#allocation4] sm:$0xf]  ;;  %v515_v30 = vsel %vm401_vm0, %v493_v12, 0.0  ;;  %v417_v44 = vrot.slane %v416_v20, 4 }
  0x5f   : > { %v496_v24 = vadd.f32 %v495_v13, %v494_v60  ;;  %v503_v25 = vadd.f32 %v502_v14, %v501_v16  ;;  %v510_v27 = vadd.f32 %v509_v15, %v508_v10  ;;  %v629_v4 = vsel %vm620_vm12, %v628_v22, 0.0 }
  0x60   : > { %v516_v39 = vrot.slane %v515_v30, 4  ;;  %v405_v31 = vrot.slane %v404_v29, 2  ;;  %v411_v37 = vadd.f32 %v410_v19, %v409_v9  ;;  %630 = vadd.xlane.f32.xlu0 %v629_v4  ;;  %v424_v49 = vrot.slane %v423_v23, 4 }
  0x61   : > { %v497_v40 = vrot.slane %v496_v24, 2  ;;  %v504_v41 = vrot.slane %v503_v25, 2  ;;  %v511_v32 = vrot.slane %v510_v27, 2  ;;  %v418_v51 = vadd.f32 %v417_v44, %v416_v20 }
  0x62   : > { %v517_v46 = vadd.f32 %v516_v39, %v515_v30  ;;  %v406_v47 = vadd.f32 %v405_v31, %v404_v29  ;;  %v412_v48 = vrot.slane %v411_v37, 2  ;;  %v425_v54 = vadd.f32 %v424_v49, %v423_v23 }
  0x63   : > { %v498_v6 = vadd.f32 %v497_v40, %v496_v24  ;;  %v505_v43 = vadd.f32 %v504_v41, %v503_v25  ;;  %v512_v50 = vadd.f32 %v511_v32, %v510_v27  ;;  %v419_v34 = vrot.slane %v418_v51, 2 }
  0x64   : > { %v518_v52 = vrot.slane %v517_v46, 2  ;;  %v407_v53 = vrot.slane %v406_v47, 1  ;;  %v413_v35 = vadd.f32 %v412_v48, %v411_v37  ;;  %v426_v8 = vrot.slane %v425_v54, 2 }
  0x65   : > { %v499_v42 = vrot.slane %v498_v6, 1  ;;  %v506_v55 = vrot.slane %v505_v43, 1  ;;  %v513_v56 = vrot.slane %v512_v50, 1  ;;  %v420_v1 = vadd.f32 %v419_v34, %v418_v51 }
  0x66   : > { %v519_v26 = vadd.f32 %v518_v52, %v517_v46  ;;  %v408_v57 = vadd.f32 %v407_v53, %v406_v47  ;;  %v414_v33 = vrot.slane %v413_v35, 1  ;;  %v427_v61 = vadd.f32 %v426_v8, %v425_v54 }
  0x67   : > { %v500_v0 = vadd.f32 %v499_v42, %v498_v6  ;;  %v507_v3 = vadd.f32 %v506_v55, %v505_v43  ;;  %v514_v58 = vadd.f32 %v513_v56, %v512_v50  ;;  %v431_v62 = vadd.f32 %v1392_v59, %v1194_v17 }
  0x68   : > { %v520_v2 = vrot.slane %v519_v26, 1  ;;  %v415_v45 = vadd.f32 %v414_v33, %v413_v35  ;;  %v421_v5 = vrot.slane %v420_v1, 1  ;;  %v432_v7 = vadd.f32 %v1396_v28, %v1196_v18 }
  0x69   : > { %v560_v63 = vsel %vm530_vm15, %v507_v3, %v500_v0  ;;  %v433_v9 = vadd.f32 %v1412_v38, %v1201_v21  ;;  %v428_v10 = vrot.slane %v427_v61, 1  ;;  %v434_v13 = vsel %vm401_vm0, %v1410_v36, 0.0 }
  0x6a   : > { %v521_v60 = vadd.f32 %v520_v2, %v519_v26  ;;  %v561_v16 = vsel %vm532_vm1, %v514_v58, %v560_v63  ;;  %v531_v11 = vsel %vm530_vm15, %v415_v45, %v408_v57  ;;  %v422_v12 = vadd.f32 %v421_v5, %v420_v1 }
  0x6b   : > { %v441_v17 = vsel %vm401_vm0, %v431_v62, 0.0  ;;  %v448_v59 = vsel %vm401_vm0, %v432_v7, 0.0  ;;  %v429_v18 = vadd.f32 %v428_v10, %v427_v61  ;;  %v435_v28 = vrot.slane %v434_v13, 4 }
  0x6c   : > { %v562_v14 = vsel %vm534_vm4, %v521_v60, %v561_v16  ;;  %v442_v15 = vrot.slane %v441_v17, 4  ;;  %v533_v21 = vsel %vm532_vm1, %v422_v12, %v531_v11  ;;  %v449_v38 = vrot.slane %v448_v59, 4 }
  0x6d   : > { %564 = vst [vmem:[#allocation5] sm:$0xf] %v562_v14  ;;  %v455_v29 = vsel %vm401_vm0, %v433_v9, 0.0  ;;  %v535_v19 = vsel %vm534_vm4, %v429_v18, %v533_v21  ;;  %v436_v20 = vadd.f32 %v435_v28, %v434_v13  ;;  %v651_v63 = vlaneseq }
  0x6e   : > { %v443_v23 = vadd.f32 %v442_v15, %v441_v17  ;;  %v456_v36 = vrot.slane %v455_v29, 4  ;;  %537 = vst [vmem:[#allocation2] sm:$0xf] %v535_v19  ;;  %v450_v22 = vadd.f32 %v449_v38, %v448_v59  ;;  %vm655_vm0 = vcmask 24576  }
  0x6f   : > { %v437_v24 = vrot.slane %v436_v20, 2  ;;  %v652_v7 = vand.u32 127, %v651_v63 }
  0x70   : > { %v444_v25 = vrot.slane %v443_v23, 2  ;;  %v457_v27 = vadd.f32 %v456_v36, %v455_v29  ;;  %v451_v30 = vrot.slane %v450_v22, 2 }
  0x71   : > { %v438_v4 = vadd.f32 %v437_v24, %v436_v20 }
  0x72   : > { %v445_v39 = vadd.f32 %v444_v25, %v443_v23  ;;  %v458_v31 = vrot.slane %v457_v27, 2  ;;  %v452_v37 = vadd.f32 %v451_v30, %v450_v22 }
  0x73   : > { %v439_v41 = vrot.slane %v438_v4, 1 }
  0x74   : > { %v639_v40 = vld [vmem:[#allocation5] sm:$0xf]  ;;  %v446_v32 = vrot.slane %v445_v39, 1  ;;  %v459_v44 = vadd.f32 %v458_v31, %v457_v27  ;;  %v453_v47 = vrot.slane %v452_v37, 1 }
  0x75   : > { %v640_v46 = vsel %vm620_vm12, %v639_v40, 0.0  ;;  %v619_v48 = vld [vmem:[#allocation2] sm:$0xf]  ;;  %v440_v49 = vadd.f32 %v439_v41, %v438_v4 }
  0x76   : > { %641 = vadd.xlane.f32.xlu0 %v640_v46  ;;  %v447_v6 = vadd.f32 %v446_v32, %v445_v39  ;;  %v460_v43 = vrot.slane %v459_v44, 1  ;;  %v621_v50 = vsel %vm620_vm12, %v619_v48, 0.0  ;;  %v454_v51 = vadd.f32 %v453_v47, %v452_v37 }
  0x77   : > { %622 = vadd.xlane.f32.xlu1 %v621_v50 }
  0x78   : > { %v461_v52 = vadd.f32 %v460_v43, %v459_v44  ;;  %v542_v53 = vsel %vm530_vm15, %v447_v6, %v440_v49 }
  0x79   : > { %v543_v35 = vsel %vm532_vm1, %v454_v51, %v542_v53 }
  0x7a   : > { %v544_v54 = vsel %vm534_vm4, %v461_v52, %v543_v35 }
  0x7b   : > { %546 = vst [vmem:[#allocation3] sm:$0xf] %v544_v54 }
  0x82   : > { %v624_v42 = vld [vmem:[#allocation3] sm:$0xf] }
  0x83   : > { %v625_v55 = vsel %vm620_vm12, %v624_v42, 0.0 }
  0x84   : > { %626 = vadd.xlane.f32.xlu1 %v625_v55 }
  0xd3   : > { %v631_v56 = vpop.xlane.xlu0 %630 }
  0xd4   : > { %v632_v34 = vrot.slane %v631_v56, 4 }
  0xd6   : > { %v633_v26 = vadd.f32 %v632_v34, %v631_v56 }
  0xd8   : > { %v634_v57 = vrot.slane %v633_v26, 2 }
  0xda   : > { %v635_v33 = vadd.f32 %v634_v57, %v633_v26 }
  0xdc   : > { %v636_v8 = vrot.slane %v635_v33, 1 }
  0xde   : > { %v637_v0 = vadd.f32 %v636_v8, %v635_v33 }
  0xe0   : > { %815 = vpush %v637_v0 }
  0xe9   : > { %v642_v3 = vpop.xlane.xlu0 %641 }
  0xea   : > { %v643_v58 = vrot.slane %v642_v3, 4  ;;  %v623_v5 = vpop.xlane.xlu1 %622 }
  0xeb   : > { %v653_v9 = vperm.slane %v623_v5, %v652_v7 }
  0xec   : > { %v644_v1 = vadd.f32 %v643_v58, %v642_v3 }
  0xed   : > { %656 = vst.msk [vmem:[%s238_s27] sm:$0x1] %vm655_vm0, %v653_v9 }
  0xee   : > { %v645_v2 = vrot.slane %v644_v1, 2 }
  0xf0   : > { %v646_v45 = vadd.f32 %v645_v2, %v644_v1 }
  0xf2   : > { %v647_v61 = vrot.slane %v646_v45, 1 }
  0xf4   : > { %v648_v62 = vadd.f32 %v647_v61, %v646_v45 }
  0xf6   : > { %817 = vpush %v648_v62 }
  0xf7   : > { %v627_v60 = vpop.xlane.xlu1 %626 }
  0xf8   : > { %v658_v16 = vperm.slane %v627_v60, %v652_v7 }
  0xfa   : > { %660 = vst.msk [vmem:[%s238_s27 + $0x1] sm:$0x1] %vm655_vm0, %v658_v16 }
 0x111   : > { %s816_s6 = spop %815 }
 0x112   : > { %v661_v10 = vstv %s816_s6 }
 0x113   : > { %663 = vst.msk [vmem:[%s238_s27 + $0x2] sm:$0x1] %vm655_vm0, %v661_v10 }
 0x127   : > { %s818_s19 = spop %817 }
 0x128   : > { %v664_v11 = vstv %s818_s19 }
 0x129   : > { %666 = vst.msk [vmem:[%s238_s27 + $0x3] sm:$0x1] %vm655_vm0, %v664_v11 }
 0x12a   : > { %999 = shalt.err (!%p996_p13)
}
 0x12b   : > { %823 = dma.vmem_to_hbm [thread:$0]  (%p1128_p9), %s682_s20, 64, %s684_s28, %s668_s29  }
 0x12c PF: > { %s695_s3 = sand.u32 1, %s1038_s9   ;;  %p833_p0 = pnand %p798_p12, %p1135_p11 }
 0x12d   : > { %s696_s21 = scalar_lea.sflag [#allocation8], %s695_s3 }
 0x12e   : > { %p834_p1 = pneg %p833_p0 }
 0x130   : > { %1033 = dma.done.wait (%p834_p1), %s696_s21, 64  }
 0x131   : > { %1035 = vsyncadd (%p834_p1), %s696_s21, 4294967232  ;;  %s21_s14 = sadd.s32 1, %s1058_s14   ;;  %s1521_s9 = smov %s1042_s10 }
 0x132   : > { %p18_p2 = scmp.ge.s32.totalorder %s21_s14, 4   ;;  %s1522_s10 = smov %s1046_s11 }
 0x133   : > { %s1523_s11 = smov %s1133_s23  ;;  %s1524_s12 = smov %s1054_s13 }
 0x134   : > { %s1525_s13 = smov %s1527_s17  ;;  %20 = sbr.rel (!%p18_p2) target bundleno = 8 (0x8), region = 98 }
 0x139   :  { %702 = vsyncpa [#allocation7], 1 }
 0x13a   :  { %704 = vsyncpa [#allocation7 + $0x1], 1 }
 0x13b   :  { %705 = vsyncpa [#allocation10], 1 }
 0x13c   :  { %707 = vsyncpa [#allocation10 + $0x1], 1 }
 0x13d   :  { %708 = vsyncpa [#allocation8], 1 }
 0x13e   :  { %710 = vsyncpa [#allocation8 + $0x1], 1 }

</bundles_post_ra>
